<compile_context>
chip_gen: v7x
topology: tpu7x:2x2x1
jax: 0.10.0
libtpu: 0.0.40
codegen_flags: <defaults>
</compile_context>

<pallas_src>
import functools

import jax
import jax.numpy as jnp
from jax.experimental import pallas as pl
from jax.experimental.pallas import tpu as pltpu

INPUT_SIZE = 39
HIDDEN = 64
OUT_DIM = 2
OUT_PAD = 128  # pad the tiny head output to a full lane width


def lstm_head_kernel(x_ref, wih_ref, whh_ref, b_ref, wout_ref, bout_ref,
                     out_ref, *, T, Bp, H):
    """Single invocation: full LSTM recurrence + Linear head, all VMEM-resident."""
    # --- Prologue: hoisted (non-recurrent) input projection -----------------
    # One (T*Bp, I) @ (I, 4H) matmul replaces T tiny matmuls on the serial path.
    pre = (
        jnp.dot(x_ref[...], wih_ref[...], preferred_element_type=jnp.float32)
        + b_ref[...]
    )  # (T*Bp, 4H), time-major: rows [t*Bp:(t+1)*Bp] belong to timestep t
    whh = whh_ref[...]  # (H, 4H), loaded once, resident

    h = jnp.zeros((Bp, H), jnp.float32)
    c = jnp.zeros((Bp, H), jnp.float32)

    # --- Recurrence: fully unrolled (T is small and static) -----------------
    # Per step: one (Bp, H) @ (H, 4H) MXU matmul + VPU/EUP gate math.
    for t in range(T):
        gates = pre[t * Bp:(t + 1) * Bp, :] + jnp.dot(
            h, whh, preferred_element_type=jnp.float32
        )  # (Bp, 4H)
        i_g = jax.nn.sigmoid(gates[:, 0 * H:1 * H])
        f_g = jax.nn.sigmoid(gates[:, 1 * H:2 * H])
        g_g = jnp.tanh(gates[:, 2 * H:3 * H])
        o_g = jax.nn.sigmoid(gates[:, 3 * H:4 * H])
        c = f_g * c + i_g * g_g
        h = o_g * jnp.tanh(c)

    # --- Linear(64, 2) head (output lanes padded to 128 -> unmasked store) --
    out_ref[...] = (
        jnp.dot(h, wout_ref[...], preferred_element_type=jnp.float32)
        + bout_ref[...]
    )


def rnn_forward(x, w_ih, w_hh, b_ih, b_hh, w_out, b_out):
    """x: (B, T, I) float32 (batch_first, as in PyTorch). Returns (B, 2) float32."""
    B, T, I = x.shape
    H = HIDDEN
    Bp = max(8, ((B + 7) // 8) * 8)  # pad batch to a sublane multiple

    # Pad batch with zero rows (sliced off at the end), lay x out time-major and
    # flatten so the prologue matmul is one lane/sublane-friendly (T*Bp, I) slab.
    x_p = jnp.zeros((Bp, T, I), jnp.float32).at[:B].set(x.astype(jnp.float32))
    x_tb = jnp.transpose(x_p, (1, 0, 2)).reshape(T * Bp, I)  # (T*Bp, I)

    w_ih_t = jnp.transpose(w_ih)                  # (I, 4H)
    w_hh_t = jnp.transpose(w_hh)                  # (H, 4H)
    b = (b_ih + b_hh).reshape(1, 4 * H)           # (1, 4H)

    # Pad the 64->2 head to 128 output lanes (zero columns) for a clean store.
    w_out_p = jnp.zeros((H, OUT_PAD), jnp.float32).at[:, :OUT_DIM].set(
        jnp.transpose(w_out))
    b_out_p = jnp.zeros((1, OUT_PAD), jnp.float32).at[:, :OUT_DIM].set(
        b_out.reshape(1, OUT_DIM))

    kernel = functools.partial(lstm_head_kernel, T=T, Bp=Bp, H=H)

    out_p = pl.pallas_call(
        kernel,
        out_shape=jax.ShapeDtypeStruct((Bp, OUT_PAD), jnp.float32),
        grid=(1,),
        in_specs=[
            pl.BlockSpec((T * Bp, I), lambda i: (0, 0)),      # x, time-major slab
            pl.BlockSpec((I, 4 * H), lambda i: (0, 0)),       # W_ih^T
            pl.BlockSpec((H, 4 * H), lambda i: (0, 0)),       # W_hh^T
            pl.BlockSpec((1, 4 * H), lambda i: (0, 0)),       # combined bias
            pl.BlockSpec((H, OUT_PAD), lambda i: (0, 0)),     # W_out^T (lane-padded)
            pl.BlockSpec((1, OUT_PAD), lambda i: (0, 0)),     # b_out (lane-padded)
        ],
        out_specs=pl.BlockSpec((Bp, OUT_PAD), lambda i: (0, 0)),
        compiler_params=pltpu.CompilerParams(
            dimension_semantics=("arbitrary",),
        ),
    )(x_tb, w_ih_t, w_hh_t, b, w_out_p, b_out_p)

    return out_p[:B, :OUT_DIM]


def rnn_forward_ref(x, w_ih, w_hh, b_ih, b_hh, w_out, b_out):
    """Pure-JAX reference matching torch.nn.LSTM + Linear semantics."""
    B, T, I = x.shape
    H = HIDDEN
    h = jnp.zeros((B, H), jnp.float32)
    c = jnp.zeros((B, H), jnp.float32)
    for t in range(T):
        gates = x[:, t] @ w_ih.T + h @ w_hh.T + b_ih + b_hh
        i_g = jax.nn.sigmoid(gates[:, 0 * H:1 * H])
        f_g = jax.nn.sigmoid(gates[:, 1 * H:2 * H])
        g_g = jnp.tanh(gates[:, 2 * H:3 * H])
        o_g = jax.nn.sigmoid(gates[:, 3 * H:4 * H])
        c = f_g * c + i_g * g_g
        h = o_g * jnp.tanh(c)
    return h @ w_out.T + b_out


def init_params(key):
    """Deterministic init mimicking PyTorch's U(-1/sqrt(H), 1/sqrt(H))."""
    H, I = HIDDEN, INPUT_SIZE
    k = 1.0 / jnp.sqrt(jnp.float32(H))
    keys = jax.random.split(key, 6)
    w_ih = jax.random.uniform(keys[0], (4 * H, I), jnp.float32, -k, k)
    w_hh = jax.random.uniform(keys[1], (4 * H, H), jnp.float32, -k, k)
    b_ih = jax.random.uniform(keys[2], (4 * H,), jnp.float32, -k, k)
    b_hh = jax.random.uniform(keys[3], (4 * H,), jnp.float32, -k, k)
    w_out = jax.random.uniform(keys[4], (OUT_DIM, H), jnp.float32, -k, k)
    b_out = jax.random.uniform(keys[5], (OUT_DIM,), jnp.float32, -k, k)
    return w_ih, w_hh, b_ih, b_hh, w_out, b_out


if __name__ == "__main__":
    key = jax.random.PRNGKey(0)
    k_x, k_p = jax.random.split(key)

    B, T, I = 2, 8, INPUT_SIZE
    x = jax.random.normal(k_x, (B, T, I), jnp.float32)
    params = init_params(k_p)

    fwd = jax.jit(rnn_forward)
    out = jax.block_until_ready(fwd(x, *params))

    ref = rnn_forward_ref(x, *params)
    assert out.shape == (B, OUT_DIM)
    err = float(jnp.max(jnp.abs(out - ref)))
    assert err < 1e-4, f"mismatch: max abs err {err}"
    print("KERNEL_OK")
</pallas_src>

<mosaic_0001>
module attributes {stable_mosaic.version = 11 : i64} {
  func.func @lstm_head_kernel(%arg0: i32, %arg1: memref<64x39xf32, #tpu.memory_space<vmem>>, %arg2: memref<39x256xf32, #tpu.memory_space<vmem>>, %arg3: memref<64x256xf32, #tpu.memory_space<vmem>>, %arg4: memref<1x256xf32, #tpu.memory_space<vmem>>, %arg5: memref<64x128xf32, #tpu.memory_space<vmem>>, %arg6: memref<1x128xf32, #tpu.memory_space<vmem>>, %arg7: memref<8x128xf32, #tpu.memory_space<vmem>>) attributes {dimension_semantics = [#tpu.dimension_semantics<arbitrary>], iteration_bounds = array<i64: 1>, scalar_prefetch = 0 : i64, scratch_operands = 0 : i64, tpu.core_type = #tpu.core_type<tc>, window_params = [{pipeline_mode = #tpu.pipeline_mode<synchronous>, transform_indices = @transform_0, window_bounds = array<i64: 64, 39>}, {pipeline_mode = #tpu.pipeline_mode<synchronous>, transform_indices = @transform_1, window_bounds = array<i64: 39, 256>}, {pipeline_mode = #tpu.pipeline_mode<synchronous>, transform_indices = @transform_2, window_bounds = array<i64: 64, 256>}, {pipeline_mode = #tpu.pipeline_mode<synchronous>, transform_indices = @transform_3, window_bounds = array<i64: 1, 256>}, {pipeline_mode = #tpu.pipeline_mode<synchronous>, transform_indices = @transform_4, window_bounds = array<i64: 64, 128>}, {pipeline_mode = #tpu.pipeline_mode<synchronous>, transform_indices = @transform_5, window_bounds = array<i64: 1, 128>}, {pipeline_mode = #tpu.pipeline_mode<synchronous>, transform_indices = @transform_6, window_bounds = array<i64: 8, 128>}]} {
    %c0 = arith.constant 0 : index
    %c0_0 = arith.constant 0 : index
    %0 = vector.load %arg1[%c0, %c0_0] : memref<64x39xf32, #tpu.memory_space<vmem>>, vector<64x39xf32>
    %c0_1 = arith.constant 0 : index
    %c0_2 = arith.constant 0 : index
    %1 = vector.load %arg2[%c0_1, %c0_2] : memref<39x256xf32, #tpu.memory_space<vmem>>, vector<39x256xf32>
    %cst = arith.constant dense<0.000000e+00> : vector<64x256xf32>
    %2 = tpu.matmul %0, %1, %cst {dimension_numbers = #tpu.dot_dimension_numbers<[1], [0], [0], [1], [0, 0, 1, 1], [], []>} : vector<64x39xf32>, vector<39x256xf32>, vector<64x256xf32> -> vector<64x256xf32>
    %c0_3 = arith.constant 0 : index
    %c0_4 = arith.constant 0 : index
    %3 = vector.load %arg4[%c0_3, %c0_4] : memref<1x256xf32, #tpu.memory_space<vmem>>, vector<1x256xf32>
    %4 = vector.broadcast %3 : vector<1x256xf32> to vector<64x256xf32>
    %5 = arith.addf %2, %4 : vector<64x256xf32>
    %c0_5 = arith.constant 0 : index
    %c0_6 = arith.constant 0 : index
    %6 = vector.load %arg3[%c0_5, %c0_6] : memref<64x256xf32, #tpu.memory_space<vmem>>, vector<64x256xf32>
    %cst_7 = arith.constant 0.000000e+00 : f32
    %7 = vector.broadcast %cst_7 : f32 to vector<8x64xf32>
    %cst_8 = arith.constant 0.000000e+00 : f32
    %8 = vector.broadcast %cst_8 : f32 to vector<8x64xf32>
    %9 = vector.extract_strided_slice %5 {offsets = [0, 0], sizes = [8, 256], strides = [1, 1]} : vector<64x256xf32> to vector<8x256xf32>
    %cst_9 = arith.constant dense<0.000000e+00> : vector<8x256xf32>
    %10 = tpu.matmul %7, %6, %cst_9 {dimension_numbers = #tpu.dot_dimension_numbers<[1], [0], [0], [1], [0, 0, 1, 1], [], []>} : vector<8x64xf32>, vector<64x256xf32>, vector<8x256xf32> -> vector<8x256xf32>
    %11 = arith.addf %9, %10 : vector<8x256xf32>
    %12 = vector.extract_strided_slice %11 {offsets = [0, 0], sizes = [8, 64], strides = [1, 1]} : vector<8x256xf32> to vector<8x64xf32>
    %13 = arith.negf %12 : vector<8x64xf32>
    %14 = math.exp %13 : vector<8x64xf32>
    %cst_10 = arith.constant 1.000000e+00 : f32
    %15 = vector.broadcast %cst_10 : f32 to vector<8x64xf32>
    %16 = arith.addf %15, %14 : vector<8x64xf32>
    %17 = arith.divf %15, %16 : vector<8x64xf32>
    %18 = vector.extract_strided_slice %11 {offsets = [0, 64], sizes = [8, 64], strides = [1, 1]} : vector<8x256xf32> to vector<8x64xf32>
    %19 = arith.negf %18 : vector<8x64xf32>
    %20 = math.exp %19 : vector<8x64xf32>
    %cst_11 = arith.constant 1.000000e+00 : f32
    %21 = vector.broadcast %cst_11 : f32 to vector<8x64xf32>
    %22 = arith.addf %21, %20 : vector<8x64xf32>
    %23 = arith.divf %21, %22 : vector<8x64xf32>
    %24 = vector.extract_strided_slice %11 {offsets = [0, 128], sizes = [8, 64], strides = [1, 1]} : vector<8x256xf32> to vector<8x64xf32>
    %25 = math.tanh %24 : vector<8x64xf32>
    %26 = vector.extract_strided_slice %11 {offsets = [0, 192], sizes = [8, 64], strides = [1, 1]} : vector<8x256xf32> to vector<8x64xf32>
    %27 = arith.negf %26 : vector<8x64xf32>
    %28 = math.exp %27 : vector<8x64xf32>
    %cst_12 = arith.constant 1.000000e+00 : f32
    %29 = vector.broadcast %cst_12 : f32 to vector<8x64xf32>
    %30 = arith.addf %29, %28 : vector<8x64xf32>
    %31 = arith.divf %29, %30 : vector<8x64xf32>
    %32 = arith.mulf %23, %8 : vector<8x64xf32>
    %33 = arith.mulf %17, %25 : vector<8x64xf32>
    %34 = arith.addf %32, %33 : vector<8x64xf32>
    %35 = math.tanh %34 : vector<8x64xf32>
    %36 = arith.mulf %31, %35 : vector<8x64xf32>
    %37 = vector.extract_strided_slice %5 {offsets = [8, 0], sizes = [8, 256], strides = [1, 1]} : vector<64x256xf32> to vector<8x256xf32>
    %cst_13 = arith.constant dense<0.000000e+00> : vector<8x256xf32>
    %38 = tpu.matmul %36, %6, %cst_13 {dimension_numbers = #tpu.dot_dimension_numbers<[1], [0], [0], [1], [0, 0, 1, 1], [], []>} : vector<8x64xf32>, vector<64x256xf32>, vector<8x256xf32> -> vector<8x256xf32>
    %39 = arith.addf %37, %38 : vector<8x256xf32>
    %40 = vector.extract_strided_slice %39 {offsets = [0, 0], sizes = [8, 64], strides = [1, 1]} : vector<8x256xf32> to vector<8x64xf32>
    %41 = arith.negf %40 : vector<8x64xf32>
    %42 = math.exp %41 : vector<8x64xf32>
    %cst_14 = arith.constant 1.000000e+00 : f32
    %43 = vector.broadcast %cst_14 : f32 to vector<8x64xf32>
    %44 = arith.addf %43, %42 : vector<8x64xf32>
    %45 = arith.divf %43, %44 : vector<8x64xf32>
    %46 = vector.extract_strided_slice %39 {offsets = [0, 64], sizes = [8, 64], strides = [1, 1]} : vector<8x256xf32> to vector<8x64xf32>
    %47 = arith.negf %46 : vector<8x64xf32>
    %48 = math.exp %47 : vector<8x64xf32>
    %cst_15 = arith.constant 1.000000e+00 : f32
    %49 = vector.broadcast %cst_15 : f32 to vector<8x64xf32>
    %50 = arith.addf %49, %48 : vector<8x64xf32>
    %51 = arith.divf %49, %50 : vector<8x64xf32>
    %52 = vector.extract_strided_slice %39 {offsets = [0, 128], sizes = [8, 64], strides = [1, 1]} : vector<8x256xf32> to vector<8x64xf32>
    %53 = math.tanh %52 : vector<8x64xf32>
    %54 = vector.extract_strided_slice %39 {offsets = [0, 192], sizes = [8, 64], strides = [1, 1]} : vector<8x256xf32> to vector<8x64xf32>
    %55 = arith.negf %54 : vector<8x64xf32>
    %56 = math.exp %55 : vector<8x64xf32>
    %cst_16 = arith.constant 1.000000e+00 : f32
    %57 = vector.broadcast %cst_16 : f32 to vector<8x64xf32>
    %58 = arith.addf %57, %56 : vector<8x64xf32>
    %59 = arith.divf %57, %58 : vector<8x64xf32>
    %60 = arith.mulf %51, %34 : vector<8x64xf32>
    %61 = arith.mulf %45, %53 : vector<8x64xf32>
    %62 = arith.addf %60, %61 : vector<8x64xf32>
    %63 = math.tanh %62 : vector<8x64xf32>
    %64 = arith.mulf %59, %63 : vector<8x64xf32>
    %65 = vector.extract_strided_slice %5 {offsets = [16, 0], sizes = [8, 256], strides = [1, 1]} : vector<64x256xf32> to vector<8x256xf32>
    %cst_17 = arith.constant dense<0.000000e+00> : vector<8x256xf32>
    %66 = tpu.matmul %64, %6, %cst_17 {dimension_numbers = #tpu.dot_dimension_numbers<[1], [0], [0], [1], [0, 0, 1, 1], [], []>} : vector<8x64xf32>, vector<64x256xf32>, vector<8x256xf32> -> vector<8x256xf32>
    %67 = arith.addf %65, %66 : vector<8x256xf32>
    %68 = vector.extract_strided_slice %67 {offsets = [0, 0], sizes = [8, 64], strides = [1, 1]} : vector<8x256xf32> to vector<8x64xf32>
    %69 = arith.negf %68 : vector<8x64xf32>
    %70 = math.exp %69 : vector<8x64xf32>
    %cst_18 = arith.constant 1.000000e+00 : f32
    %71 = vector.broadcast %cst_18 : f32 to vector<8x64xf32>
    %72 = arith.addf %71, %70 : vector<8x64xf32>
    %73 = arith.divf %71, %72 : vector<8x64xf32>
    %74 = vector.extract_strided_slice %67 {offsets = [0, 64], sizes = [8, 64], strides = [1, 1]} : vector<8x256xf32> to vector<8x64xf32>
    %75 = arith.negf %74 : vector<8x64xf32>
    %76 = math.exp %75 : vector<8x64xf32>
    %cst_19 = arith.constant 1.000000e+00 : f32
    %77 = vector.broadcast %cst_19 : f32 to vector<8x64xf32>
    %78 = arith.addf %77, %76 : vector<8x64xf32>
    %79 = arith.divf %77, %78 : vector<8x64xf32>
    %80 = vector.extract_strided_slice %67 {offsets = [0, 128], sizes = [8, 64], strides = [1, 1]} : vector<8x256xf32> to vector<8x64xf32>
    %81 = math.tanh %80 : vector<8x64xf32>
    %82 = vector.extract_strided_slice %67 {offsets = [0, 192], sizes = [8, 64], strides = [1, 1]} : vector<8x256xf32> to vector<8x64xf32>
    %83 = arith.negf %82 : vector<8x64xf32>
    %84 = math.exp %83 : vector<8x64xf32>
    %cst_20 = arith.constant 1.000000e+00 : f32
    %85 = vector.broadcast %cst_20 : f32 to vector<8x64xf32>
    %86 = arith.addf %85, %84 : vector<8x64xf32>
    %87 = arith.divf %85, %86 : vector<8x64xf32>
    %88 = arith.mulf %79, %62 : vector<8x64xf32>
    %89 = arith.mulf %73, %81 : vector<8x64xf32>
    %90 = arith.addf %88, %89 : vector<8x64xf32>
    %91 = math.tanh %90 : vector<8x64xf32>
    %92 = arith.mulf %87, %91 : vector<8x64xf32>
    %93 = vector.extract_strided_slice %5 {offsets = [24, 0], sizes = [8, 256], strides = [1, 1]} : vector<64x256xf32> to vector<8x256xf32>
    %cst_21 = arith.constant dense<0.000000e+00> : vector<8x256xf32>
    %94 = tpu.matmul %92, %6, %cst_21 {dimension_numbers = #tpu.dot_dimension_numbers<[1], [0], [0], [1], [0, 0, 1, 1], [], []>} : vector<8x64xf32>, vector<64x256xf32>, vector<8x256xf32> -> vector<8x256xf32>
    %95 = arith.addf %93, %94 : vector<8x256xf32>
    %96 = vector.extract_strided_slice %95 {offsets = [0, 0], sizes = [8, 64], strides = [1, 1]} : vector<8x256xf32> to vector<8x64xf32>
    %97 = arith.negf %96 : vector<8x64xf32>
    %98 = math.exp %97 : vector<8x64xf32>
    %cst_22 = arith.constant 1.000000e+00 : f32
    %99 = vector.broadcast %cst_22 : f32 to vector<8x64xf32>
    %100 = arith.addf %99, %98 : vector<8x64xf32>
    %101 = arith.divf %99, %100 : vector<8x64xf32>
    %102 = vector.extract_strided_slice %95 {offsets = [0, 64], sizes = [8, 64], strides = [1, 1]} : vector<8x256xf32> to vector<8x64xf32>
    %103 = arith.negf %102 : vector<8x64xf32>
    %104 = math.exp %103 : vector<8x64xf32>
    %cst_23 = arith.constant 1.000000e+00 : f32
    %105 = vector.broadcast %cst_23 : f32 to vector<8x64xf32>
    %106 = arith.addf %105, %104 : vector<8x64xf32>
    %107 = arith.divf %105, %106 : vector<8x64xf32>
    %108 = vector.extract_strided_slice %95 {offsets = [0, 128], sizes = [8, 64], strides = [1, 1]} : vector<8x256xf32> to vector<8x64xf32>
    %109 = math.tanh %108 : vector<8x64xf32>
    %110 = vector.extract_strided_slice %95 {offsets = [0, 192], sizes = [8, 64], strides = [1, 1]} : vector<8x256xf32> to vector<8x64xf32>
    %111 = arith.negf %110 : vector<8x64xf32>
    %112 = math.exp %111 : vector<8x64xf32>
    %cst_24 = arith.constant 1.000000e+00 : f32
    %113 = vector.broadcast %cst_24 : f32 to vector<8x64xf32>
    %114 = arith.addf %113, %112 : vector<8x64xf32>
    %115 = arith.divf %113, %114 : vector<8x64xf32>
    %116 = arith.mulf %107, %90 : vector<8x64xf32>
    %117 = arith.mulf %101, %109 : vector<8x64xf32>
    %118 = arith.addf %116, %117 : vector<8x64xf32>
    %119 = math.tanh %118 : vector<8x64xf32>
    %120 = arith.mulf %115, %119 : vector<8x64xf32>
    %121 = vector.extract_strided_slice %5 {offsets = [32, 0], sizes = [8, 256], strides = [1, 1]} : vector<64x256xf32> to vector<8x256xf32>
    %cst_25 = arith.constant dense<0.000000e+00> : vector<8x256xf32>
    %122 = tpu.matmul %120, %6, %cst_25 {dimension_numbers = #tpu.dot_dimension_numbers<[1], [0], [0], [1], [0, 0, 1, 1], [], []>} : vector<8x64xf32>, vector<64x256xf32>, vector<8x256xf32> -> vector<8x256xf32>
    %123 = arith.addf %121, %122 : vector<8x256xf32>
    %124 = vector.extract_strided_slice %123 {offsets = [0, 0], sizes = [8, 64], strides = [1, 1]} : vector<8x256xf32> to vector<8x64xf32>
    %125 = arith.negf %124 : vector<8x64xf32>
    %126 = math.exp %125 : vector<8x64xf32>
    %cst_26 = arith.constant 1.000000e+00 : f32
    %127 = vector.broadcast %cst_26 : f32 to vector<8x64xf32>
    %128 = arith.addf %127, %126 : vector<8x64xf32>
    %129 = arith.divf %127, %128 : vector<8x64xf32>
    %130 = vector.extract_strided_slice %123 {offsets = [0, 64], sizes = [8, 64], strides = [1, 1]} : vector<8x256xf32> to vector<8x64xf32>
    %131 = arith.negf %130 : vector<8x64xf32>
    %132 = math.exp %131 : vector<8x64xf32>
    %cst_27 = arith.constant 1.000000e+00 : f32
    %133 = vector.broadcast %cst_27 : f32 to vector<8x64xf32>
    %134 = arith.addf %133, %132 : vector<8x64xf32>
    %135 = arith.divf %133, %134 : vector<8x64xf32>
    %136 = vector.extract_strided_slice %123 {offsets = [0, 128], sizes = [8, 64], strides = [1, 1]} : vector<8x256xf32> to vector<8x64xf32>
    %137 = math.tanh %136 : vector<8x64xf32>
    %138 = vector.extract_strided_slice %123 {offsets = [0, 192], sizes = [8, 64], strides = [1, 1]} : vector<8x256xf32> to vector<8x64xf32>
    %139 = arith.negf %138 : vector<8x64xf32>
    %140 = math.exp %139 : vector<8x64xf32>
    %cst_28 = arith.constant 1.000000e+00 : f32
    %141 = vector.broadcast %cst_28 : f32 to vector<8x64xf32>
    %142 = arith.addf %141, %140 : vector<8x64xf32>
    %143 = arith.divf %141, %142 : vector<8x64xf32>
    %144 = arith.mulf %135, %118 : vector<8x64xf32>
    %145 = arith.mulf %129, %137 : vector<8x64xf32>
    %146 = arith.addf %144, %145 : vector<8x64xf32>
    %147 = math.tanh %146 : vector<8x64xf32>
    %148 = arith.mulf %143, %147 : vector<8x64xf32>
    %149 = vector.extract_strided_slice %5 {offsets = [40, 0], sizes = [8, 256], strides = [1, 1]} : vector<64x256xf32> to vector<8x256xf32>
    %cst_29 = arith.constant dense<0.000000e+00> : vector<8x256xf32>
    %150 = tpu.matmul %148, %6, %cst_29 {dimension_numbers = #tpu.dot_dimension_numbers<[1], [0], [0], [1], [0, 0, 1, 1], [], []>} : vector<8x64xf32>, vector<64x256xf32>, vector<8x256xf32> -> vector<8x256xf32>
    %151 = arith.addf %149, %150 : vector<8x256xf32>
    %152 = vector.extract_strided_slice %151 {offsets = [0, 0], sizes = [8, 64], strides = [1, 1]} : vector<8x256xf32> to vector<8x64xf32>
    %153 = arith.negf %152 : vector<8x64xf32>
    %154 = math.exp %153 : vector<8x64xf32>
    %cst_30 = arith.constant 1.000000e+00 : f32
    %155 = vector.broadcast %cst_30 : f32 to vector<8x64xf32>
    %156 = arith.addf %155, %154 : vector<8x64xf32>
    %157 = arith.divf %155, %156 : vector<8x64xf32>
    %158 = vector.extract_strided_slice %151 {offsets = [0, 64], sizes = [8, 64], strides = [1, 1]} : vector<8x256xf32> to vector<8x64xf32>
    %159 = arith.negf %158 : vector<8x64xf32>
    %160 = math.exp %159 : vector<8x64xf32>
    %cst_31 = arith.constant 1.000000e+00 : f32
    %161 = vector.broadcast %cst_31 : f32 to vector<8x64xf32>
    %162 = arith.addf %161, %160 : vector<8x64xf32>
    %163 = arith.divf %161, %162 : vector<8x64xf32>
    %164 = vector.extract_strided_slice %151 {offsets = [0, 128], sizes = [8, 64], strides = [1, 1]} : vector<8x256xf32> to vector<8x64xf32>
    %165 = math.tanh %164 : vector<8x64xf32>
    %166 = vector.extract_strided_slice %151 {offsets = [0, 192], sizes = [8, 64], strides = [1, 1]} : vector<8x256xf32> to vector<8x64xf32>
    %167 = arith.negf %166 : vector<8x64xf32>
    %168 = math.exp %167 : vector<8x64xf32>
    %cst_32 = arith.constant 1.000000e+00 : f32
    %169 = vector.broadcast %cst_32 : f32 to vector<8x64xf32>
    %170 = arith.addf %169, %168 : vector<8x64xf32>
    %171 = arith.divf %169, %170 : vector<8x64xf32>
    %172 = arith.mulf %163, %146 : vector<8x64xf32>
    %173 = arith.mulf %157, %165 : vector<8x64xf32>
    %174 = arith.addf %172, %173 : vector<8x64xf32>
    %175 = math.tanh %174 : vector<8x64xf32>
    %176 = arith.mulf %171, %175 : vector<8x64xf32>
    %177 = vector.extract_strided_slice %5 {offsets = [48, 0], sizes = [8, 256], strides = [1, 1]} : vector<64x256xf32> to vector<8x256xf32>
    %cst_33 = arith.constant dense<0.000000e+00> : vector<8x256xf32>
    %178 = tpu.matmul %176, %6, %cst_33 {dimension_numbers = #tpu.dot_dimension_numbers<[1], [0], [0], [1], [0, 0, 1, 1], [], []>} : vector<8x64xf32>, vector<64x256xf32>, vector<8x256xf32> -> vector<8x256xf32>
    %179 = arith.addf %177, %178 : vector<8x256xf32>
    %180 = vector.extract_strided_slice %179 {offsets = [0, 0], sizes = [8, 64], strides = [1, 1]} : vector<8x256xf32> to vector<8x64xf32>
    %181 = arith.negf %180 : vector<8x64xf32>
    %182 = math.exp %181 : vector<8x64xf32>
    %cst_34 = arith.constant 1.000000e+00 : f32
    %183 = vector.broadcast %cst_34 : f32 to vector<8x64xf32>
    %184 = arith.addf %183, %182 : vector<8x64xf32>
    %185 = arith.divf %183, %184 : vector<8x64xf32>
    %186 = vector.extract_strided_slice %179 {offsets = [0, 64], sizes = [8, 64], strides = [1, 1]} : vector<8x256xf32> to vector<8x64xf32>
    %187 = arith.negf %186 : vector<8x64xf32>
    %188 = math.exp %187 : vector<8x64xf32>
    %cst_35 = arith.constant 1.000000e+00 : f32
    %189 = vector.broadcast %cst_35 : f32 to vector<8x64xf32>
    %190 = arith.addf %189, %188 : vector<8x64xf32>
    %191 = arith.divf %189, %190 : vector<8x64xf32>
    %192 = vector.extract_strided_slice %179 {offsets = [0, 128], sizes = [8, 64], strides = [1, 1]} : vector<8x256xf32> to vector<8x64xf32>
    %193 = math.tanh %192 : vector<8x64xf32>
    %194 = vector.extract_strided_slice %179 {offsets = [0, 192], sizes = [8, 64], strides = [1, 1]} : vector<8x256xf32> to vector<8x64xf32>
    %195 = arith.negf %194 : vector<8x64xf32>
    %196 = math.exp %195 : vector<8x64xf32>
    %cst_36 = arith.constant 1.000000e+00 : f32
    %197 = vector.broadcast %cst_36 : f32 to vector<8x64xf32>
    %198 = arith.addf %197, %196 : vector<8x64xf32>
    %199 = arith.divf %197, %198 : vector<8x64xf32>
    %200 = arith.mulf %191, %174 : vector<8x64xf32>
    %201 = arith.mulf %185, %193 : vector<8x64xf32>
    %202 = arith.addf %200, %201 : vector<8x64xf32>
    %203 = math.tanh %202 : vector<8x64xf32>
    %204 = arith.mulf %199, %203 : vector<8x64xf32>
    %205 = vector.extract_strided_slice %5 {offsets = [56, 0], sizes = [8, 256], strides = [1, 1]} : vector<64x256xf32> to vector<8x256xf32>
    %cst_37 = arith.constant dense<0.000000e+00> : vector<8x256xf32>
    %206 = tpu.matmul %204, %6, %cst_37 {dimension_numbers = #tpu.dot_dimension_numbers<[1], [0], [0], [1], [0, 0, 1, 1], [], []>} : vector<8x64xf32>, vector<64x256xf32>, vector<8x256xf32> -> vector<8x256xf32>
    %207 = arith.addf %205, %206 : vector<8x256xf32>
    %208 = vector.extract_strided_slice %207 {offsets = [0, 0], sizes = [8, 64], strides = [1, 1]} : vector<8x256xf32> to vector<8x64xf32>
    %209 = arith.negf %208 : vector<8x64xf32>
    %210 = math.exp %209 : vector<8x64xf32>
    %cst_38 = arith.constant 1.000000e+00 : f32
    %211 = vector.broadcast %cst_38 : f32 to vector<8x64xf32>
    %212 = arith.addf %211, %210 : vector<8x64xf32>
    %213 = arith.divf %211, %212 : vector<8x64xf32>
    %214 = vector.extract_strided_slice %207 {offsets = [0, 64], sizes = [8, 64], strides = [1, 1]} : vector<8x256xf32> to vector<8x64xf32>
    %215 = arith.negf %214 : vector<8x64xf32>
    %216 = math.exp %215 : vector<8x64xf32>
    %cst_39 = arith.constant 1.000000e+00 : f32
    %217 = vector.broadcast %cst_39 : f32 to vector<8x64xf32>
    %218 = arith.addf %217, %216 : vector<8x64xf32>
    %219 = arith.divf %217, %218 : vector<8x64xf32>
    %220 = vector.extract_strided_slice %207 {offsets = [0, 128], sizes = [8, 64], strides = [1, 1]} : vector<8x256xf32> to vector<8x64xf32>
    %221 = math.tanh %220 : vector<8x64xf32>
    %222 = vector.extract_strided_slice %207 {offsets = [0, 192], sizes = [8, 64], strides = [1, 1]} : vector<8x256xf32> to vector<8x64xf32>
    %223 = arith.negf %222 : vector<8x64xf32>
    %224 = math.exp %223 : vector<8x64xf32>
    %cst_40 = arith.constant 1.000000e+00 : f32
    %225 = vector.broadcast %cst_40 : f32 to vector<8x64xf32>
    %226 = arith.addf %225, %224 : vector<8x64xf32>
    %227 = arith.divf %225, %226 : vector<8x64xf32>
    %228 = arith.mulf %219, %202 : vector<8x64xf32>
    %229 = arith.mulf %213, %221 : vector<8x64xf32>
    %230 = arith.addf %228, %229 : vector<8x64xf32>
    %231 = math.tanh %230 : vector<8x64xf32>
    %232 = arith.mulf %227, %231 : vector<8x64xf32>
    %c0_41 = arith.constant 0 : index
    %c0_42 = arith.constant 0 : index
    %233 = vector.load %arg5[%c0_41, %c0_42] : memref<64x128xf32, #tpu.memory_space<vmem>>, vector<64x128xf32>
    %cst_43 = arith.constant dense<0.000000e+00> : vector<8x128xf32>
    %234 = tpu.matmul %232, %233, %cst_43 {dimension_numbers = #tpu.dot_dimension_numbers<[1], [0], [0], [1], [0, 0, 1, 1], [], []>} : vector<8x64xf32>, vector<64x128xf32>, vector<8x128xf32> -> vector<8x128xf32>
    %c0_44 = arith.constant 0 : index
    %c0_45 = arith.constant 0 : index
    %235 = vector.load %arg6[%c0_44, %c0_45] : memref<1x128xf32, #tpu.memory_space<vmem>>, vector<1x128xf32>
    %236 = vector.broadcast %235 : vector<1x128xf32> to vector<8x128xf32>
    %237 = arith.addf %234, %236 : vector<8x128xf32>
    %c0_46 = arith.constant 0 : index
    %c0_47 = arith.constant 0 : index
    %238 = vector.load %arg7[%c0_46, %c0_47] : memref<8x128xf32, #tpu.memory_space<vmem>>, vector<8x128xf32>
    tpu.vector_store %arg7[%c0_46, %c0_47], %237 {strides = array<i32>} : memref<8x128xf32, #tpu.memory_space<vmem>>, vector<8x128xf32>,
    return
  }
  func.func @transform_0(%arg0: i32) -> (i32, i32) {
    %c0_i32 = arith.constant 0 : i32
    %c0_i32_0 = arith.constant 0 : i32
    %c0_i32_1 = arith.constant 0 : i32
    return %c0_i32, %c0_i32_0 : i32, i32
  }
  func.func @transform_1(%arg0: i32) -> (i32, i32) {
    %c0_i32 = arith.constant 0 : i32
    %c0_i32_0 = arith.constant 0 : i32
    %c0_i32_1 = arith.constant 0 : i32
    return %c0_i32, %c0_i32_0 : i32, i32
  }
  func.func @transform_2(%arg0: i32) -> (i32, i32) {
    %c0_i32 = arith.constant 0 : i32
    %c0_i32_0 = arith.constant 0 : i32
    %c0_i32_1 = arith.constant 0 : i32
    return %c0_i32, %c0_i32_0 : i32, i32
  }
  func.func @transform_3(%arg0: i32) -> (i32, i32) {
    %c0_i32 = arith.constant 0 : i32
    %c0_i32_0 = arith.constant 0 : i32
    %c0_i32_1 = arith.constant 0 : i32
    return %c0_i32, %c0_i32_0 : i32, i32
  }
  func.func @transform_4(%arg0: i32) -> (i32, i32) {
    %c0_i32 = arith.constant 0 : i32
    %c0_i32_0 = arith.constant 0 : i32
    %c0_i32_1 = arith.constant 0 : i32
    return %c0_i32, %c0_i32_0 : i32, i32
  }
  func.func @transform_5(%arg0: i32) -> (i32, i32) {
    %c0_i32 = arith.constant 0 : i32
    %c0_i32_0 = arith.constant 0 : i32
    %c0_i32_1 = arith.constant 0 : i32
    return %c0_i32, %c0_i32_0 : i32, i32
  }
  func.func @transform_6(%arg0: i32) -> (i32, i32) {
    %c0_i32 = arith.constant 0 : i32
    %c0_i32_0 = arith.constant 0 : i32
    %c0_i32_1 = arith.constant 0 : i32
    return %c0_i32, %c0_i32_0 : i32, i32
  }
}

</mosaic_0001>

<bundles_post_ra>
// kernel: rnn_forward.1
= control target key start
LH: loop header
LB: loop body
LE: loop exit
PB: predicated region body
PF: predicated region fallthrough
CT: control target
= control target key end

     0   :  { %v1451_v3 = vmov 0.0   ;;  %vm78_vm0 = vcmask 1046528   ;;  %vm53_vm1 = vcmask 318464   ;;  %v43_v51 = vlaneseq  ;;  %s1807_s1 = inlined_call_operand.vmem [shape: f32[39,256], index: 1, kind: input, shape index: {}]   ;;  %s1808_s2 = inlined_call_operand.vmem [shape: f32[64,256], index: 2, kind: input, shape index: {}]   ;;  %s1809_s0 = inlined_call_operand.vmem [shape: f32[64,39], index: 0, kind: input, shape index: {}]   ;;  %s1810_s3 = inlined_call_operand.vmem [shape: f32[1,256], index: 3, kind: input, shape index: {}]   ;;  %s1811_s4 = inlined_call_operand.vmem [shape: f32[64,128], index: 4, kind: input, shape index: {}]   ;;  %s1812_s5 = inlined_call_operand.vmem [shape: f32[1,128], index: 5, kind: input, shape index: {}]   ;;  %s1813_s6 = inlined_call_operand.vmem [shape: f32[8,128], index: 6, kind: output, shape index: {}]  }
   0x1   :  { %v32_v0 = vld [vmem:[%s1807_s1 + $0x8] sm:$0xff]  ;;  %v34_v1 = vld [vmem:[%s1807_s1 + $0x18] sm:$0xff]  ;;  %v31_v2 = vld [vmem:[%s1807_s1] sm:$0xff]  ;;  %149 = vmatprep.mubr.f32.mxu1 %v1451_v3  ;;  %582 = vmatprep.mubr.f32.mxu0 %v1451_v3  ;;  %vm214_vm2 = vcmask 523264   ;;  %vm1454_vm3 = vmmov 0  }
   0x2   :  { %v1171_v4 = vpack.c.bf16 %v34_v1, %v32_v0  ;;  %v33_v5 = vld [vmem:[%s1807_s1 + $0x10] sm:$0xff]  ;;  %v36_v6 = vld [vmem:[%s1807_s1 + $0x28] sm:$0xff]  ;;  %v38_v7 = vld [vmem:[%s1807_s1 + $0x38] sm:$0xff]  ;;  %v44_v54 = vshrl.u32 %v43_v51, 7 }
   0x3   :  { %v1173_v8 = vpack.c.bf16 %v33_v5, %v31_v2  ;;  %v1175_v9 = vpack.c.bf16 %v38_v7, %v36_v6  ;;  %v35_v10 = vld [vmem:[%s1807_s1 + $0x20] sm:$0xff]  ;;  %v37_v11 = vld [vmem:[%s1807_s1 + $0x30] sm:$0xff]  ;;  %v199_v12 = vld [vmem:[%s1808_s2 + $0x8] sm:$0xff] }
   0x4   :  { %1172 = vmatprep.subr.bf16.mxu1 %v1171_v4  ;;  %v1177_v13 = vpack.c.bf16 %v37_v11, %v35_v10  ;;  %v201_v14 = vld [vmem:[%s1808_s2 + $0x18] sm:$0xff]  ;;  %v198_v15 = vld [vmem:[%s1808_s2] sm:$0xff]  ;;  %v200_v16 = vld [vmem:[%s1808_s2 + $0x10] sm:$0xff]  ;;  %v45_v57 = vsub.s32 0, %v44_v54  ;;  %v49_v2 = vsub.s32 1, %v44_v54 }
   0x5   :  { %1174 = vmatpush1.bf16.msra.mxu1 %v1173_v8  ;;  %v1528_v17 = vpack.c.bf16 %v201_v14, %v199_v12  ;;  %v203_v18 = vld [vmem:[%s1808_s2 + $0x28] sm:$0xff]  ;;  %v1536_v20 = vpack.c.bf16 %v200_v16, %v198_v15  ;;  %v205_v21 = vld [vmem:[%s1808_s2 + $0x38] sm:$0xff]  ;;  %v202_v23 = vld [vmem:[%s1808_s2 + $0x20] sm:$0xff] }
   0x6   :  { %1176 = vmatprep.subr.bf16.mxu1 %v1175_v9  ;;  %v40_v19 = vld [vmem:[%s1807_s1 + $0x48] sm:$0x7f]  ;;  %v1541_v22 = vpack.c.bf16 %v205_v21, %v203_v18  ;;  %v204_v24 = vld [vmem:[%s1808_s2 + $0x30] sm:$0xff]  ;;  %v39_v25 = vld [vmem:[%s1807_s1 + $0x40] sm:$0x7f] }
   0x7   :  { %1228 = vmatprep.subr.bf16.mxu0 %v1528_v17  ;;  %v23_v26 = vld [vmem:[%s1809_s0] sm:$0xff]  ;;  %v1559_v27 = vpack.c.bf16 %v204_v24, %v202_v23  ;;  %v207_v28 = vld [vmem:[%s1808_s2 + $0x48] sm:$0xff]  ;;  %v209_v29 = vld [vmem:[%s1808_s2 + $0x58] sm:$0xff] }
   0x8   :  { %1230 = vmatpush1.bf16.msra.mxu0 %v1536_v20  ;;  %v206_v30 = vld [vmem:[%s1808_s2 + $0x40] sm:$0xff]  ;;  %v208_v31 = vld [vmem:[%s1808_s2 + $0x50] sm:$0xff]  ;;  %v211_v32 = vld [vmem:[%s1808_s2 + $0x68] sm:$0xff]  ;;  %v1583_v34 = vpack.c.bf16 %v209_v29, %v207_v28 }
   0x9   :  { %1178 = vmatpush1.bf16.msra.mxu1 %v1177_v13  ;;  %1232 = vmatprep.subr.bf16.mxu0 %v1541_v22  ;;  %v213_v33 = vld [vmem:[%s1808_s2 + $0x78] sm:$0xff]  ;;  %v24_v35 = vld [vmem:[%s1809_s0 + $0x8] sm:$0xff]  ;;  %v1590_v36 = vpack.c.bf16 %v208_v31, %v206_v30  ;;  %v210_v38 = vld [vmem:[%s1808_s2 + $0x60] sm:$0xff] }
   0xa   :  { %1108 = vmatprep.subr.msk.mxu1 %vm78_vm0, %v40_v19  ;;  %v1593_v37 = vpack.c.bf16 %v213_v33, %v211_v32  ;;  %v212_v39 = vld [vmem:[%s1808_s2 + $0x70] sm:$0xff]  ;;  %v26_v42 = vld [vmem:[%s1809_s0 + $0x18] sm:$0xff]  ;;  %v27_v43 = vld [vmem:[%s1809_s0 + $0x20] sm:$0xff] }
   0xb   :  { %v25_v40 = vld [vmem:[%s1809_s0 + $0x10] sm:$0xff]  ;;  %v1610_v41 = vpack.c.bf16 %v212_v39, %v210_v38  ;;  %v28_v44 = vld [vmem:[%s1809_s0 + $0x28] sm:$0xff]  ;;  %v30_v46 = vld [vmem:[%s1809_s0 + $0x38] sm:$0xff] }
   0xc   :  { %1234 = vmatpush1.bf16.msra.mxu0 %v1559_v27  ;;  %v29_v45 = vld [vmem:[%s1809_s0 + $0x30] sm:$0xff]  ;;  %v41_v58 = vld [vmem:[%s1810_s3] sm:$0x3]  ;;  %s1452_s3 = smov 64  }
   0xd   :  { %1109 = vmatpush1.msk.msra.mxu1 %vm78_vm0, %v39_v25  ;;  %1236 = vmatprep.subr.bf16.mxu0 %v1583_v34  ;;  %v1679_v61 = vrot.slane %v41_v58, %v45_v57  ;;  %v1682_v4 = vrot.slane %v41_v58, %v49_v2 }
   0xe   :  { %1110 = vmatmul.mubr.msk.f32.vlgmr.msra.gmra.mrb[0].mxu1 %vm53_vm1, %v23_v26  ;;  %1180 = vmatprep.subr.bf16.mxu1 %v1528_v17 }
   0xf   :  { %1182 = vmatpush1.bf16.msra.mxu1 %v1536_v20  ;;  %155 = vmatprep.mubr.f32.mxu1 %v1451_v3 }
  0x10   :  { %1184 = vmatprep.subr.bf16.mxu1 %v1541_v22  ;;  %1238 = vmatpush1.bf16.msra.mxu0 %v1590_v36 }
  0x11   :  { %1240 = vmatprep.subr.bf16.mxu0 %v1593_v37 }
  0x12   :  { %1111 = vmatmul.mubr.msk.f32.gmra.mrb[2].mxu1 %vm53_vm1, %v24_v35 }
  0x13   :  { %161 = vmatprep.mubr.f32.mxu1 %v1451_v3  ;;  %1186 = vmatpush1.bf16.msra.mxu1 %v1559_v27 }
  0x14   :  { %1188 = vmatprep.subr.bf16.mxu1 %v1583_v34  ;;  %1242 = vmatpush1.bf16.msra.mxu0 %v1610_v41 }
  0x15   :  { %1244 = vmatprep.subr.bf16.mxu0 %v1528_v17 }
  0x16   :  { %1112 = vmatmul.mubr.msk.f32.gmra.mrb[4].mxu1 %vm53_vm1, %v25_v40 }
  0x17   :  { %167 = vmatprep.mubr.f32.mxu1 %v1451_v3  ;;  %1190 = vmatpush1.bf16.msra.mxu1 %v1590_v36 }
  0x18   :  { %1192 = vmatprep.subr.bf16.mxu1 %v1593_v37 }
  0x1a   :  { %1113 = vmatmul.mubr.msk.f32.gmra.mrb[6].mxu1 %vm53_vm1, %v26_v42 }
  0x1b   :  { %173 = vmatprep.mubr.f32.mxu1 %v1451_v3  ;;  %1194 = vmatpush1.bf16.msra.mxu1 %v1610_v41 }
  0x1c   :  { %1196 = vmatprep.subr.bf16.mxu1 %v1528_v17 }
  0x1e   :  { %1114 = vmatmul.mubr.msk.f32.gmra.mrb[8].mxu1 %vm53_vm1, %v27_v43 }
  0x1f   :  { %179 = vmatprep.mubr.f32.mxu1 %v1451_v3 }
  0x22   :  { %1115 = vmatmul.mubr.msk.f32.gmra.mrb[10].mxu1 %vm53_vm1, %v28_v44 }
  0x23   :  { %185 = vmatprep.mubr.f32.mxu1 %v1451_v3 }
  0x26   :  { %1116 = vmatmul.mubr.msk.f32.gmra.mrb[12].mxu1 %vm53_vm1, %v29_v45 }
  0x27   :  { %191 = vmatprep.mubr.f32.mxu1 %v1451_v3 }
  0x2a   :  { %1117 = vmatmul.mubr.msk.f32.gmra.mrb[14].mxu1 %vm53_vm1, %v30_v46 }
  0x2b   :  { %282 = vmatprep.mubr.f32.mxu1 %v1451_v3 }
  0x2e   :  { %283 = vmatmul.mubr.f32.vlgmr.msra.gmra.mrb[0].mxu1 %v1451_v3 }
  0x2f   :  { %1198 = vmatpush1.bf16.msra.mxu1 %v1536_v20  ;;  %382 = vmatprep.mubr.f32.mxu1 %v1451_v3 }
  0x30   :  { %1200 = vmatprep.subr.bf16.mxu1 %v1541_v22 }
  0x33   :  { %1202 = vmatpush1.bf16.msra.mxu1 %v1559_v27 }
  0x34   :  { %1204 = vmatprep.subr.bf16.mxu1 %v1583_v34 }
  0x37   :  { %1206 = vmatpush1.bf16.msra.mxu1 %v1590_v36 }
  0x38   :  { %1208 = vmatprep.subr.bf16.mxu1 %v1593_v37 }
  0x3b   :  { %1210 = vmatpush1.bf16.msra.mxu1 %v1610_v41 }
  0x3c   :  { %1212 = vmatprep.subr.bf16.mxu1 %v1528_v17 }
  0xed   :  { %v1656_v47 = vpop.f32.mrb[6].mxu1 }
  0xee   :  { %v1658_v48 = vpop.f32.mrb[7].mxu1 }
  0xf1   :  { %v1660_v49 = vpop.f32.mrb[8].mxu1 }
  0xf2   :  { %v1662_v50 = vpop.f32.mrb[9].mxu1 }
  0xf5   :  { %v1664_v52 = vpop.f32.mrb[10].mxu1 }
  0xf6   :  { %v1666_v53 = vpop.f32.mrb[11].mxu1 }
  0xf9   :  { %v1668_v55 = vpop.f32.mrb[12].mxu1 }
  0xfa   :  { %v1670_v56 = vpop.f32.mrb[13].mxu1 }
  0xfd   :  { %v1675_v59 = vpop.f32.mrb[14].mxu1 }
  0xfe   :  { %v1677_v60 = vpop.f32.mrb[15].mxu1 }
 0x101   :  { %v284_v62 = vpop.f32.mrb[0].mxu1 }
 0x102   :  { %v1319_v63 = vadd.f32 %v284_v62, %v1679_v61  ;;  %v286_v0 = vpop.f32.mrb[1].mxu1 }
 0x103   :  { %v1320_v5 = vadd.f32 %v286_v0, %v1682_v4 }
 0x104   :  { %v1118_v1 = vmul.f32 -1.442695, %v1319_v63 }
 0x105   :  { %v1119_v11 = vmul.f32 -1.442695, %v1320_v5 }
 0x106   :  { %1355 = vpow2.f32 %v1118_v1 }
 0x107   :  { %1357 = vtanh.f32 %v1320_v5 }
 0x110   :  { %v1356_v6 = vpop.eup %1355 }
 0x111   :  { %v294_v7 = vadd.f32 1.0, %v1356_v6  ;;  %v1358_v8 = vpop.eup %1357 }
 0x113   :  { %1359 = vrcp.f32 %v294_v7 }
 0x114   :  { %1361 = vpow2.f32 %v1119_v11 }
 0x11d   :  { %v1360_v9 = vpop.eup %1359 }
 0x11e   :  { %v305_v10 = vmul.f32 %v1360_v9, %v1358_v8  ;;  %v1362_v12 = vpop.eup %1361  ;;  %v304_v14 = vmul.f32 0.0, %v1360_v9 }
 0x11f   :  { %v301_v13 = vadd.f32 1.0, %v1362_v12 }
 0x120   :  { %307 = vrot.lane.b32.xlu0 %v305_v10, %s1452_s3 }
 0x121   :  { %1363 = vrcp.f32 %v301_v13 }
 0x12b   :  { %v1364_v18 = vpop.eup %1363 }
 0x192   :  { %v308_v15 = vpop.permute.xlu0 %307 }
 0x193   :  { %v310_v16 = vadd.f32 %v308_v15, %v304_v14 }
 0x195   :  { %1365 = vtanh.f32 %v310_v16 }
 0x19f   :  { %v1366_v19 = vpop.eup %1365 }
 0x1a0   :  { %v312_v21 = vmul.f32 %v1366_v19, %v1364_v18  ;;  %v170_v19 = vadd.f32 %v1656_v47, %v1679_v61 }
 0x1a2   :  { %314 = vrot.lane.b32.xlu0 %v312_v21, %s1452_s3  ;;  %v172_v21 = vadd.f32 %v1658_v48, %v1682_v4 }
 0x214   :  { %v315_v23 = vpop.permute.xlu0 %314 }
 0x215   :  { %1120 = vmatmul.mubr.msk.f32.vlgmr.msra.gmra.mrb[2].mxu1 %vm214_vm2, %v315_v23 }
 0x216   :  { %1214 = vmatpush1.bf16.msra.mxu1 %v1536_v20  ;;  %482 = vmatprep.mubr.f32.mxu1 %v1451_v3 }
 0x217   :  { %1216 = vmatprep.subr.bf16.mxu1 %v1541_v22 }
 0x21a   :  { %1218 = vmatpush1.bf16.msra.mxu1 %v1559_v27 }
 0x21b   :  { %1220 = vmatprep.subr.bf16.mxu1 %v1583_v34 }
 0x21e   :  { %1222 = vmatpush1.bf16.msra.mxu1 %v1590_v36 }
 0x21f   :  { %1224 = vmatprep.subr.bf16.mxu1 %v1593_v37 }
 0x222   :  { %1226 = vmatpush1.bf16.msra.mxu1 %v1610_v41 }
 0x2e8   :  { %v384_v24 = vpop.f32.mrb[2].mxu1 }
 0x2e9   :  { %v1321_v25 = vadd.f32 %v384_v24, %v1679_v61  ;;  %v386_v26 = vpop.f32.mrb[3].mxu1 }
 0x2ea   :  { %v1322_v29 = vadd.f32 %v386_v26, %v1682_v4 }
 0x2eb   :  { %v1121_v28 = vmul.f32 -1.442695, %v1321_v25 }
 0x2ec   :  { %v1122_v38 = vmul.f32 -1.442695, %v1322_v29 }
 0x2ed   :  { %1367 = vpow2.f32 %v1121_v28 }
 0x2ee   :  { %1369 = vtanh.f32 %v1322_v29 }
 0x2f7   :  { %v1368_v30 = vpop.eup %1367 }
 0x2f8   :  { %v394_v31 = vadd.f32 1.0, %v1368_v30  ;;  %v1370_v32 = vpop.eup %1369 }
 0x2fa   :  { %1371 = vrcp.f32 %v394_v31 }
 0x2fb   :  { %1373 = vpow2.f32 %v1122_v38 }
 0x304   :  { %v1372_v33 = vpop.eup %1371 }
 0x305   :  { %v405_v35 = vmul.f32 %v1372_v33, %v1370_v32  ;;  %v1374_v39 = vpop.eup %1373  ;;  %v404_v42 = vmul.f32 %v1372_v33, %v310_v16 }
 0x306   :  { %v401_v40 = vadd.f32 1.0, %v1374_v39 }
 0x307   :  { %407 = vrot.lane.b32.xlu1 %v405_v35, %s1452_s3 }
 0x308   :  { %1375 = vrcp.f32 %v401_v40 }
 0x312   :  { %v1376_v45 = vpop.eup %1375 }
 0x379   :  { %v408_v43 = vpop.permute.xlu1 %407 }
 0x37a   :  { %v410_v44 = vadd.f32 %v408_v43, %v404_v42 }
 0x37c   :  { %1377 = vtanh.f32 %v410_v44 }
 0x386   :  { %v1378_v46 = vpop.eup %1377 }
 0x387   :  { %v412_v51 = vmul.f32 %v1378_v46, %v1376_v45  ;;  %v176_v46 = vadd.f32 %v1660_v49, %v1679_v61 }
 0x389   :  { %414 = vrot.lane.b32.xlu1 %v412_v51, %s1452_s3  ;;  %v178_v51 = vadd.f32 %v1662_v50, %v1682_v4 }
 0x3fb   :  { %v415_v54 = vpop.permute.xlu1 %414 }
 0x3fc   :  { %1123 = vmatmul.mubr.msk.f32.vlgmr.msra.gmra.mrb[4].mxu1 %vm214_vm2, %v415_v54 }
 0x3fd   :  { %1168 = vmatprep.mubr.msk.f32.mxu1 %vm1454_vm3, %v1451_v3 }
 0x4cf   :  { %v484_v57 = vpop.f32.mrb[4].mxu1 }
 0x4d0   :  { %v1323_v58 = vadd.f32 %v484_v57, %v1679_v61  ;;  %v486_v62 = vpop.f32.mrb[5].mxu1 }
 0x4d1   :  { %v1324_v0 = vadd.f32 %v486_v62, %v1682_v4 }
 0x4d2   :  { %v1124_v63 = vmul.f32 -1.442695, %v1323_v58 }
 0x4d3   :  { %v1125_v8 = vmul.f32 -1.442695, %v1324_v0 }
 0x4d4   :  { %1379 = vpow2.f32 %v1124_v63 }
 0x4d5   :  { %1381 = vtanh.f32 %v1324_v0 }
 0x4de   :  { %v1380_v1 = vpop.eup %1379 }
 0x4df   :  { %v494_v2 = vadd.f32 1.0, %v1380_v1  ;;  %v1382_v5 = vpop.eup %1381 }
 0x4e1   :  { %1383 = vrcp.f32 %v494_v2 }
 0x4e2   :  { %1385 = vpow2.f32 %v1125_v8 }
 0x4eb   :  { %v1384_v6 = vpop.eup %1383 }
 0x4ec   :  { %v505_v7 = vmul.f32 %v1384_v6, %v1382_v5  ;;  %v1386_v9 = vpop.eup %1385  ;;  %v504_v11 = vmul.f32 %v1384_v6, %v410_v44 }
 0x4ed   :  { %v501_v10 = vadd.f32 1.0, %v1386_v9 }
 0x4ee   :  { %507 = vrot.lane.b32.xlu0 %v505_v7, %s1452_s3 }
 0x4ef   :  { %1387 = vrcp.f32 %v501_v10 }
 0x4f9   :  { %v1388_v14 = vpop.eup %1387 }
 0x560   :  { %v508_v12 = vpop.permute.xlu0 %507 }
 0x561   :  { %v510_v13 = vadd.f32 %v508_v12, %v504_v11 }
 0x563   :  { %1389 = vtanh.f32 %v510_v13 }
 0x56d   :  { %v1390_v15 = vpop.eup %1389 }
 0x56e   :  { %v512_v16 = vmul.f32 %v1390_v15, %v1388_v14  ;;  %v182_v15 = vadd.f32 %v1664_v52, %v1679_v61 }
 0x570   :  { %514 = vrot.lane.b32.xlu1 %v512_v16, %s1452_s3  ;;  %v184_v16 = vadd.f32 %v1666_v53, %v1682_v4 }
 0x5e2   :  { %v515_v18 = vpop.permute.xlu1 %514 }
 0x5e3   :  { %1126 = vmatmul.mubr.msk.f32.vlgmr.msra.gmra.mrb[0].mxu0 %vm214_vm2, %v515_v18 }
 0x5e4   :  { %1246 = vmatpush1.bf16.msra.mxu0 %v1536_v20  ;;  %682 = vmatprep.mubr.f32.mxu0 %v1451_v3 }
 0x5e5   :  { %1248 = vmatprep.subr.bf16.mxu0 %v1541_v22 }
 0x5e8   :  { %1250 = vmatpush1.bf16.msra.mxu0 %v1559_v27 }
 0x5e9   :  { %1252 = vmatprep.subr.bf16.mxu0 %v1583_v34 }
 0x5ec   :  { %1254 = vmatpush1.bf16.msra.mxu0 %v1590_v36 }
 0x5ed   :  { %1256 = vmatprep.subr.bf16.mxu0 %v1593_v37 }
 0x5f0   :  { %1258 = vmatpush1.bf16.msra.mxu0 %v1610_v41 }
 0x5f1   :  { %1260 = vmatprep.subr.bf16.mxu0 %v1528_v17 }
 0x6b6   :  { %v584_v23 = vpop.f32.mrb[0].mxu0 }
 0x6b7   :  { %v589_v24 = vadd.f32 %v584_v23, %v170_v19  ;;  %v586_v25 = vpop.f32.mrb[1].mxu0 }
 0x6b8   :  { %v590_v26 = vadd.f32 %v586_v25, %v172_v21 }
 0x6b9   :  { %v1127_v28 = vmul.f32 -1.442695, %v589_v24 }
 0x6ba   :  { %v1128_v35 = vmul.f32 -1.442695, %v590_v26 }
 0x6bb   :  { %1391 = vpow2.f32 %v1127_v28 }
 0x6bc   :  { %1393 = vtanh.f32 %v590_v26 }
 0x6c5   :  { %v1392_v29 = vpop.eup %1391 }
 0x6c6   :  { %v594_v30 = vadd.f32 1.0, %v1392_v29  ;;  %v1394_v31 = vpop.eup %1393 }
 0x6c8   :  { %1395 = vrcp.f32 %v594_v30 }
 0x6c9   :  { %1397 = vpow2.f32 %v1128_v35 }
 0x6d2   :  { %v1396_v32 = vpop.eup %1395 }
 0x6d3   :  { %v605_v33 = vmul.f32 %v1396_v32, %v1394_v31  ;;  %v1398_v47 = vpop.eup %1397  ;;  %v604_v48 = vmul.f32 %v1396_v32, %v510_v13 }
 0x6d4   :  { %v601_v38 = vadd.f32 1.0, %v1398_v47 }
 0x6d5   :  { %607 = vrot.lane.b32.xlu0 %v605_v33, %s1452_s3 }
 0x6d6   :  { %1399 = vrcp.f32 %v601_v38 }
 0x6e0   :  { %v1400_v42 = vpop.eup %1399 }
 0x747   :  { %v608_v39 = vpop.permute.xlu0 %607 }
 0x748   :  { %v610_v40 = vadd.f32 %v608_v39, %v604_v48  ;;  %v188_v39 = vadd.f32 %v1668_v55, %v1679_v61 }
 0x74a   :  { %1401 = vtanh.f32 %v610_v40 }
 0x754   :  { %v1402_v43 = vpop.eup %1401 }
 0x755   :  { %v612_v44 = vmul.f32 %v1402_v43, %v1400_v42 }
 0x757   :  { %614 = vrot.lane.b32.xlu1 %v612_v44, %s1452_s3 }
 0x7c9   :  { %v615_v45 = vpop.permute.xlu1 %614 }
 0x7ca   :  { %1129 = vmatmul.mubr.msk.f32.vlgmr.msra.gmra.mrb[2].mxu0 %vm214_vm2, %v615_v45 }
 0x7cb   :  { %1262 = vmatpush1.bf16.msra.mxu0 %v1536_v20  ;;  %782 = vmatprep.mubr.f32.mxu0 %v1451_v3 }
 0x7cc   :  { %1264 = vmatprep.subr.bf16.mxu0 %v1541_v22 }
 0x7cf   :  { %1266 = vmatpush1.bf16.msra.mxu0 %v1559_v27 }
 0x7d0   :  { %1268 = vmatprep.subr.bf16.mxu0 %v1583_v34 }
 0x7d3   :  { %1270 = vmatpush1.bf16.msra.mxu0 %v1590_v36 }
 0x7d4   :  { %1272 = vmatprep.subr.bf16.mxu0 %v1593_v37 }
 0x7d7   :  { %1274 = vmatpush1.bf16.msra.mxu0 %v1610_v41 }
 0x7d8   :  { %1276 = vmatprep.subr.bf16.mxu0 %v1528_v17 }
 0x89d   :  { %v684_v54 = vpop.f32.mrb[2].mxu0 }
 0x89e   :  { %v689_v57 = vadd.f32 %v684_v54, %v176_v46  ;;  %v686_v58 = vpop.f32.mrb[3].mxu0 }
 0x89f   :  { %v690_v62 = vadd.f32 %v686_v58, %v178_v51 }
 0x8a0   :  { %v1130_v63 = vmul.f32 -1.442695, %v689_v57 }
 0x8a1   :  { %v1131_v7 = vmul.f32 -1.442695, %v690_v62 }
 0x8a2   :  { %1403 = vpow2.f32 %v1130_v63 }
 0x8a3   :  { %1405 = vtanh.f32 %v690_v62 }
 0x8ac   :  { %v1404_v0 = vpop.eup %1403 }
 0x8ad   :  { %v694_v1 = vadd.f32 1.0, %v1404_v0  ;;  %v1406_v2 = vpop.eup %1405  ;;  %v194_v0 = vadd.f32 %v1675_v59, %v1679_v61  ;;  %v1013_v59 = vld [vmem:[%s1811_s4] sm:$0xff]  ;;  %v1015_v61 = vld [vmem:[%s1811_s4 + $0x10] sm:$0xff] }
 0x8af   :  { %1407 = vrcp.f32 %v694_v1  ;;  %v196_v1 = vadd.f32 %v1677_v60, %v1682_v4  ;;  %v1014_v60 = vld [vmem:[%s1811_s4 + $0x8] sm:$0xff] }
 0x8b0   :  { %1409 = vpow2.f32 %v1131_v7 }
 0x8b9   :  { %v1408_v5 = vpop.eup %1407 }
 0x8ba   :  { %v705_v6 = vmul.f32 %v1408_v5, %v1406_v2  ;;  %v1410_v49 = vpop.eup %1409  ;;  %v704_v50 = vmul.f32 %v1408_v5, %v610_v40 }
 0x8bb   :  { %v701_v8 = vadd.f32 1.0, %v1410_v49 }
 0x8bc   :  { %707 = vrot.lane.b32.xlu0 %v705_v6, %s1452_s3 }
 0x8bd   :  { %1411 = vrcp.f32 %v701_v8 }
 0x8c7   :  { %v1412_v11 = vpop.eup %1411 }
 0x92e   :  { %v708_v9 = vpop.permute.xlu0 %707 }
 0x92f   :  { %v710_v10 = vadd.f32 %v708_v9, %v704_v50 }
 0x931   :  { %1413 = vtanh.f32 %v710_v10 }
 0x93b   :  { %v1414_v12 = vpop.eup %1413 }
 0x93c   :  { %v712_v13 = vmul.f32 %v1414_v12, %v1412_v11  ;;  %v1453_v12 = vmov 0.0|0.0  }
 0x93d   :  { %1307 = vmatprep.subr.bf16.mxu1 %v1453_v12 }
 0x93e   :  { %714 = vrot.lane.b32.xlu1 %v712_v13, %s1452_s3  ;;  %v1016_v13 = vld [vmem:[%s1811_s4 + $0x18] sm:$0xff] }
 0x9b0   :  { %v715_v14 = vpop.permute.xlu1 %714 }
 0x9b1   :  { %1132 = vmatmul.mubr.msk.f32.vlgmr.msra.gmra.mrb[4].mxu0 %vm214_vm2, %v715_v14  ;;  %v1311_v14 = vpack.c.bf16 %v1016_v13, %v1015_v61 }
 0x9b2   :  { %1278 = vmatpush1.bf16.msra.mxu0 %v1536_v20  ;;  %882 = vmatprep.mubr.f32.mxu0 %v1451_v3 }
 0x9b3   :  { %1280 = vmatprep.subr.bf16.mxu0 %v1541_v22 }
 0x9b6   :  { %1282 = vmatpush1.bf16.msra.mxu0 %v1559_v27 }
 0x9b7   :  { %1284 = vmatprep.subr.bf16.mxu0 %v1583_v34 }
 0x9ba   :  { %1286 = vmatpush1.bf16.msra.mxu0 %v1590_v36 }
 0x9bb   :  { %1288 = vmatprep.subr.bf16.mxu0 %v1593_v37 }
 0x9be   :  { %1290 = vmatpush1.bf16.msra.mxu0 %v1610_v41 }
 0x9bf   :  { %1292 = vmatprep.subr.bf16.mxu0 %v1528_v17 }
 0xa84   :  { %v784_v18 = vpop.f32.mrb[4].mxu0 }
 0xa85   :  { %v789_v19 = vadd.f32 %v784_v18, %v182_v15  ;;  %v786_v21 = vpop.f32.mrb[5].mxu0  ;;  %v1017_v15 = vld [vmem:[%s1811_s4 + $0x20] sm:$0xff] }
 0xa86   :  { %v790_v23 = vadd.f32 %v786_v21, %v184_v16  ;;  %v1018_v16 = vld [vmem:[%s1811_s4 + $0x28] sm:$0xff] }
 0xa87   :  { %v1133_v24 = vmul.f32 -1.442695, %v789_v19  ;;  %v1314_v18 = vpack.c.bf16 %v1018_v16, %v1017_v15  ;;  %v1020_v19 = vld [vmem:[%s1811_s4 + $0x38] sm:$0xff] }
 0xa88   :  { %v1134_v17 = vmul.f32 -1.442695, %v790_v23 }
 0xa89   :  { %1415 = vpow2.f32 %v1133_v24 }
 0xa8a   :  { %1417 = vtanh.f32 %v790_v23 }
 0xa93   :  { %v1416_v25 = vpop.eup %1415 }
 0xa94   :  { %v794_v26 = vadd.f32 1.0, %v1416_v25  ;;  %v1418_v28 = vpop.eup %1417 }
 0xa96   :  { %1419 = vrcp.f32 %v794_v26 }
 0xa97   :  { %1421 = vpow2.f32 %v1134_v17 }
 0xaa0   :  { %v1420_v29 = vpop.eup %1419 }
 0xaa1   :  { %v805_v30 = vmul.f32 %v1420_v29, %v1418_v28  ;;  %v1422_v52 = vpop.eup %1421  ;;  %v804_v53 = vmul.f32 %v1420_v29, %v710_v10 }
 0xaa2   :  { %v801_v31 = vadd.f32 1.0, %v1422_v52 }
 0xaa3   :  { %807 = vrot.lane.b32.xlu0 %v805_v30, %s1452_s3 }
 0xaa4   :  { %1423 = vrcp.f32 %v801_v31 }
 0xaae   :  { %v1424_v35 = vpop.eup %1423 }
 0xb15   :  { %v808_v32 = vpop.permute.xlu0 %807 }
 0xb16   :  { %v810_v33 = vadd.f32 %v808_v32, %v804_v53  ;;  %v1141_v53 = vld [vmem:[%s1812_s5] ss:$0 sm:$0xff] }
 0xb18   :  { %1425 = vtanh.f32 %v810_v33 }
 0xb22   :  { %v1426_v47 = vpop.eup %1425 }
 0xb23   :  { %v812_v38 = vmul.f32 %v1426_v47, %v1424_v35 }
 0xb25   :  { %814 = vrot.lane.b32.xlu1 %v812_v38, %s1452_s3 }
 0xb97   :  { %v815_v48 = vpop.permute.xlu1 %814 }
 0xb98   :  { %1135 = vmatmul.mubr.msk.f32.vlgmr.msra.gmra.mrb[6].mxu0 %vm214_vm2, %v815_v48 }
 0xb99   :  { %1294 = vmatpush1.bf16.msra.mxu0 %v1536_v20  ;;  %982 = vmatprep.mubr.f32.mxu0 %v1451_v3  ;;  %v190_v20 = vadd.f32 %v1670_v56, %v1682_v4  ;;  %v1308_v4 = vpack.c.bf16 %v1014_v60, %v1013_v59  ;;  %v1019_v3 = vld [vmem:[%s1811_s4 + $0x30] sm:$0xff] }
 0xb9a   :  { %1296 = vmatprep.subr.bf16.mxu0 %v1541_v22  ;;  %v1317_v21 = vpack.c.bf16 %v1020_v19, %v1019_v3 }
 0xb9b   :  { %1309 = vmatpush3.bf16.msra.mxu1 %v1308_v4 }
 0xb9c   :  { %1310 = vmatprep.subr.bf16.mxu1 %v1453_v12 }
 0xb9d   :  { %1298 = vmatpush1.bf16.msra.mxu0 %v1559_v27 }
 0xb9e   :  { %1300 = vmatprep.subr.bf16.mxu0 %v1583_v34 }
 0xb9f   :  { %1312 = vmatpush3.bf16.msra.mxu1 %v1311_v14 }
 0xba0   :  { %1313 = vmatprep.subr.bf16.mxu1 %v1453_v12 }
 0xba1   :  { %1302 = vmatpush1.bf16.msra.mxu0 %v1590_v36 }
 0xba2   :  { %1304 = vmatprep.subr.bf16.mxu0 %v1593_v37 }
 0xba3   :  { %1315 = vmatpush3.bf16.msra.mxu1 %v1314_v18 }
 0xba4   :  { %1316 = vmatprep.subr.bf16.mxu1 %v1453_v12 }
 0xba5   :  { %1306 = vmatpush1.bf16.msra.mxu0 %v1610_v41 }
 0xba7   :  { %1318 = vmatpush3.bf16.msra.mxu1 %v1317_v21 }
 0xc6b   :  { %v884_v40 = vpop.f32.mrb[6].mxu0 }
 0xc6c   :  { %v889_v42 = vadd.f32 %v884_v40, %v188_v39  ;;  %v886_v43 = vpop.f32.mrb[7].mxu0 }
 0xc6d   :  { %v890_v22 = vadd.f32 %v886_v43, %v190_v20 }
 0xc6e   :  { %v1136_v44 = vmul.f32 -1.442695, %v889_v42 }
 0xc6f   :  { %v1137_v41 = vmul.f32 -1.442695, %v890_v22 }
 0xc70   :  { %1427 = vpow2.f32 %v1136_v44 }
 0xc71   :  { %1429 = vtanh.f32 %v890_v22 }
 0xc7a   :  { %v1428_v27 = vpop.eup %1427 }
 0xc7b   :  { %v894_v34 = vadd.f32 1.0, %v1428_v27  ;;  %v1430_v36 = vpop.eup %1429 }
 0xc7d   :  { %1431 = vrcp.f32 %v894_v34 }
 0xc7e   :  { %1433 = vpow2.f32 %v1137_v41 }
 0xc87   :  { %v1432_v37 = vpop.eup %1431 }
 0xc88   :  { %v905_v45 = vmul.f32 %v1432_v37, %v1430_v36  ;;  %v1434_v55 = vpop.eup %1433  ;;  %v904_v56 = vmul.f32 %v1432_v37, %v810_v33 }
 0xc89   :  { %v901_v46 = vadd.f32 1.0, %v1434_v55 }
 0xc8a   :  { %907 = vrot.lane.b32.xlu0 %v905_v45, %s1452_s3 }
 0xc8b   :  { %1435 = vrcp.f32 %v901_v46 }
 0xc95   :  { %v1436_v57 = vpop.eup %1435 }
 0xcfc   :  { %v908_v51 = vpop.permute.xlu0 %907 }
 0xcfd   :  { %v910_v54 = vadd.f32 %v908_v51, %v904_v56 }
 0xcff   :  { %1437 = vtanh.f32 %v910_v54 }
 0xd09   :  { %v1438_v58 = vpop.eup %1437 }
 0xd0a   :  { %v912_v62 = vmul.f32 %v1438_v58, %v1436_v57 }
 0xd0c   :  { %914 = vrot.lane.b32.xlu1 %v912_v62, %s1452_s3 }
 0xd7e   :  { %v915_v63 = vpop.permute.xlu1 %914 }
 0xd7f   :  { %1138 = vmatmul.mubr.msk.f32.vlgmr.msra.gmra.mrb[8].mxu0 %vm214_vm2, %v915_v63 }
 0xe52   :  { %v984_v2 = vpop.f32.mrb[8].mxu0 }
 0xe53   :  { %v989_v5 = vadd.f32 %v984_v2, %v194_v0  ;;  %v986_v6 = vpop.f32.mrb[9].mxu0 }
 0xe54   :  { %v990_v7 = vadd.f32 %v986_v6, %v196_v1 }
 0xe55   :  { %v1139_v49 = vmul.f32 -1.442695, %v989_v5 }
 0xe56   :  { %v1140_v23 = vmul.f32 -1.442695, %v990_v7 }
 0xe57   :  { %1439 = vpow2.f32 %v1139_v49 }
 0xe58   :  { %1441 = vtanh.f32 %v990_v7 }
 0xe61   :  { %v1440_v8 = vpop.eup %1439 }
 0xe62   :  { %v994_v50 = vadd.f32 1.0, %v1440_v8  ;;  %v1442_v9 = vpop.eup %1441 }
 0xe64   :  { %1443 = vrcp.f32 %v994_v50 }
 0xe65   :  { %1445 = vpow2.f32 %v1140_v23 }
 0xe6e   :  { %v1444_v10 = vpop.eup %1443 }
 0xe6f   :  { %v1005_v11 = vmul.f32 %v1444_v10, %v1442_v9  ;;  %v1446_v24 = vpop.eup %1445  ;;  %v1004_v26 = vmul.f32 %v1444_v10, %v910_v54 }
 0xe70   :  { %v1001_v25 = vadd.f32 1.0, %v1446_v24 }
 0xe71   :  { %1007 = vrot.lane.b32.xlu0 %v1005_v11, %s1452_s3 }
 0xe72   :  { %1447 = vrcp.f32 %v1001_v25 }
 0xe7c   :  { %v1448_v30 = vpop.eup %1447 }
 0xee3   :  { %v1008_v28 = vpop.permute.xlu0 %1007 }
 0xee4   :  { %v1010_v29 = vadd.f32 %v1008_v28, %v1004_v26 }
 0xee6   :  { %1449 = vtanh.f32 %v1010_v29 }
 0xef0   :  { %v1450_v17 = vpop.eup %1449 }
 0xef1   :  { %v1012_v52 = vmul.f32 %v1450_v17, %v1448_v30 }
 0xef3   :  { %1029 = vrot.lane.b32.xlu1 %v1012_v52, %s1452_s3 }
 0xf65   :  { %v1030_v31 = vpop.permute.xlu1 %1029 }
 0xf66   :  { %1169 = vmatmul.mubr.msk.f32.vlgmr.msra.gmra.mrb[16].mxu1 %vm214_vm2, %v1030_v31 }
0x1039   :  { %v1099_v32 = vpop.f32.mrb[16].mxu1 }
0x103a   :  { %v1100_v33 = vadd.f32 %v1141_v53, %v1099_v32  ;;  %v1170_v35 = vpop.f32.mrb[17].mxu1 }
0x103c   :  { %1103 = vst [vmem:[%s1813_s6] sm:$0xff] %v1100_v33 }

</bundles_post_ra>
